<compile_context>
chip_gen: v6e
topology: v6e:2x2x1
jax: 0.10.0
libtpu: 0.0.40
codegen_flags: <defaults>
</compile_context>

<pallas_src>
import functools
import math

import jax
import jax.numpy as jnp
from jax.experimental import pallas as pl
from jax.experimental.pallas import tpu as pltpu

EMB = 128            # embedding_size
NUM_CLASSES = 256    # num_classes
ARC_SCALE = 30.0
ARC_MARGIN = 0.5
BN_EPS = 1e-5

CONV1_KPAD = 256     # im2col contraction 147 -> 256 (lane-dense K)
CONV1_CPAD = 128     # conv1 output channels 64 -> 128 (unmasked stores)
ATT_HID_PAD = 128    # channel-attention hidden dim padded to 128 lanes
HEAD_TN = 256        # per-grid-step slab width of the 4096x1024 head weight


def _vmem_limit_bytes():
    """Per-generation VMEM budget: ~75% of physical, capped at 100 MiB."""
    cap = 128 << 20
    try:
        info = pltpu.get_tpu_info()
        cap = int(getattr(info, "vmem_capacity_bytes", cap) or cap)
    except Exception:
        pass
    return int(min(100 << 20, (cap * 3) // 4))


_VMEM_LIMIT = _vmem_limit_bytes()
_TM_MAX = 512 if _VMEM_LIMIT >= (72 << 20) else 256   # 512 v5e/v6e, 256 v7x

_VMEM_SPEC = pl.BlockSpec(memory_space=pltpu.MemorySpace.VMEM)
_CPARAMS = pltpu.CompilerParams(vmem_limit_bytes=_VMEM_LIMIT)


def _round_up(x, m):
    return ((x + m - 1) // m) * m


# ----------------------------------------------------------------------------
# Tiled matmul + bias + optional ReLU (bf16 weights, f32 accumulation)
# ----------------------------------------------------------------------------
def _matmul_bias_act_kernel(x_ref, w_ref, b_ref, o_ref, *, relu):
    acc = jnp.dot(x_ref[...].astype(jnp.bfloat16), w_ref[...],
                  preferred_element_type=jnp.float32)
    acc = acc + b_ref[...]
    if relu:
        acc = jnp.maximum(acc, 0.0)
    o_ref[...] = acc


def matmul_bias_act(x, w, b, relu):
    """x: (M, K) f32, w: (K, N) bf16, b: (1, N) f32  ->  (M, N) f32."""
    M, K = x.shape
    N = w.shape[1]
    TM = min(_TM_MAX, _round_up(max(M, 8), 8))
    Mp = _round_up(M, TM)
    if Mp != M:
        x = jnp.pad(x, ((0, Mp - M), (0, 0)))
    out = pl.pallas_call(
        functools.partial(_matmul_bias_act_kernel, relu=relu),
        out_shape=jax.ShapeDtypeStruct((Mp, N), jnp.float32),
        grid=(Mp // TM,),
        in_specs=[pl.BlockSpec((TM, K), lambda i: (i, 0)),
                  pl.BlockSpec((K, N), lambda i: (0, 0)),
                  pl.BlockSpec((1, N), lambda i: (0, 0))],
        out_specs=pl.BlockSpec((TM, N), lambda i: (i, 0)),
        compiler_params=pltpu.CompilerParams(
            dimension_semantics=("parallel",),
            vmem_limit_bytes=_VMEM_LIMIT),
    )(x, w, b)
    return out[:M] if Mp != M else out


# ----------------------------------------------------------------------------
# Attention module: x * (spatial_attention * channel_attention)
# ----------------------------------------------------------------------------
def _attention_kernel(x_ref, xpad_ref, wsp_ref, bsp_ref, w1_ref, b1_ref,
                      w2_ref, b2_ref, o_ref, *, H, W):
    """x: (B,H,W,C) unpadded; xpad: (B,H+6,W+6,C) zero-padded (pad=3).

    wsp: (C, 128) bf16, column k = (dh,dw)=(k//7,k%7) tap of the 7x7 conv
         (BN folded); columns 49..127 are zero.
    w1/b1, w2/b2: channel-attention 1x1 convs (C -> 128(pad of C//16) -> C).
    """
    x = x_ref[...]                                          # (B, H, W, C)
    xpad = xpad_ref[...]                                    # (B, Hp, Wp, C)
    B, C = x.shape[0], x.shape[-1]
    Hp, Wp = H + 6, W + 6
    KP = wsp_ref.shape[-1]                                  # 128

    # --- spatial attention: C-contraction on the MXU, shifts on the VPU ---
    taps = jnp.dot(xpad.reshape(B * Hp * Wp, C).astype(jnp.bfloat16),
                   wsp_ref[...], preferred_element_type=jnp.float32)
    taps = taps.reshape(B, Hp, Wp, KP)                      # lane k = tap k
    lane = jax.lax.broadcasted_iota(jnp.int32, (1, 1, 1, KP), 3)
    acc = jnp.zeros((B, H, W, KP), jnp.float32)
    for dh in range(7):
        for dw in range(7):
            k = dh * 7 + dw
            acc = acc + jnp.where(lane == k,
                                  taps[:, dh:dh + H, dw:dw + W, :], 0.0)
    s = jnp.sum(acc, axis=-1) + bsp_ref[0, 0]               # (B, H, W)
    sa = jax.nn.sigmoid(s)

    # --- channel attention: GAP -> 1x1 -> ReLU -> 1x1 -> sigmoid (f32 EW) ---
    pooled = jnp.mean(x, axis=(1, 2))                       # (B, C)
    h = jnp.dot(pooled.astype(jnp.bfloat16), w1_ref[...],
                preferred_element_type=jnp.float32)
    h = jnp.maximum(h + b1_ref[...], 0.0)                   # (B, 128)
    ca = jnp.dot(h.astype(jnp.bfloat16), w2_ref[...],
                 preferred_element_type=jnp.float32)
    ca = jax.nn.sigmoid(ca + b2_ref[...])                   # (B, C)

    o_ref[...] = x * sa[:, :, :, None] * ca[:, None, None, :]


def attention_module(x, p):
    B, H, W, C = x.shape
    xpad = jnp.pad(x, ((0, 0), (3, 3), (3, 3), (0, 0)))
    return pl.pallas_call(
        functools.partial(_attention_kernel, H=H, W=W),
        out_shape=jax.ShapeDtypeStruct((B, H, W, C), jnp.float32),
        in_specs=[_VMEM_SPEC] * 8,
        out_specs=_VMEM_SPEC,
        compiler_params=_CPARAMS,
    )(x, xpad, p["wsp_t"], p["bsp"], p["w1"], p["b1"], p["w2"], p["b2"])


# ----------------------------------------------------------------------------
# Fused tail: GAP/GMP pool + embedding MLP + L2 norm + ArcMarginProduct.
# Grid streams HEAD_TN-wide slabs of the 4096x1024 weight (K-reduction acc).
# ----------------------------------------------------------------------------
def _tail_kernel(x_ref, w1_ref, b1_ref, w2_ref, b2_ref, warc_ref, *rest,
                 scale, cos_m, sin_m, th, mm, with_label):
    if with_label:
        label_ref, emb_ref, out_ref, feats_sc, e_sc = rest
    else:
        emb_ref, out_ref, feats_sc, e_sc = rest

    i = pl.program_id(0)
    nb = pl.num_programs(0)

    @pl.when(i == 0)
    def _():
        x = x_ref[...]                                      # (B, H, W, C)
        C = x.shape[-1]
        feats_sc[:, :C] = jnp.mean(x, axis=(1, 2))          # GAP
        feats_sc[:, C:] = jnp.max(x, axis=(1, 2))           # GMP
        e_sc[...] = jnp.zeros_like(e_sc)

    feats = feats_sc[...]                                   # (B, 4096)
    # Linear(4096,1024)+BN+ReLU (+Dropout=id), one TN-wide slab per grid step.
    h = jnp.dot(feats.astype(jnp.bfloat16), w1_ref[...],
                preferred_element_type=jnp.float32)
    h = jnp.maximum(h + b1_ref[...], 0.0)                   # (B, TN)
    # Partial contribution of Linear(1024, EMB)+BN over this slab's rows.
    e_sc[...] += jnp.dot(h.astype(jnp.bfloat16), w2_ref[...],
                         preferred_element_type=jnp.float32)

    @pl.when(i == nb - 1)
    def _():
        e = e_sc[...] + b2_ref[...]                         # (B, EMB)
        # F.normalize(embedding, p=2, dim=1)
        en = e / jnp.maximum(
            jnp.sqrt(jnp.sum(e * e, axis=1, keepdims=True)), 1e-12)
        emb_ref[...] = en

        # ArcMarginProduct: cosine = normalize(emb) @ normalize(W).T
        warc = warc_ref[...]                                # (EMB, NUM_CLASSES)
        wn = warc / jnp.maximum(
            jnp.sqrt(jnp.sum(warc * warc, axis=0, keepdims=True)), 1e-12)
        cosine = jnp.dot(en, wn, preferred_element_type=jnp.float32)

        if not with_label:
            out_ref[...] = cosine
        else:
            sine = jnp.sqrt(jnp.clip(1.0 - cosine * cosine, 0.0, 1.0))
            phi = cosine * cos_m - sine * sin_m
            phi = jnp.where(cosine > th, phi, cosine - mm)
            ids = jax.lax.broadcasted_iota(jnp.int32, cosine.shape, 1)
            one_hot = (ids == label_ref[...]).astype(cosine.dtype)
            out_ref[...] = (one_hot * phi + (1.0 - one_hot) * cosine) * scale


def tail_pool_embed_arcface(x, p, label=None):
    B, H, W, C = x.shape
    NH = p["head_w1"].shape[1]                              # 1024
    NB = NH // HEAD_TN
    consts = dict(
        scale=ARC_SCALE,
        cos_m=math.cos(ARC_MARGIN),
        sin_m=math.sin(ARC_MARGIN),
        th=math.cos(math.pi - ARC_MARGIN),
        mm=math.sin(math.pi - ARC_MARGIN) * ARC_MARGIN,
        with_label=label is not None,
    )
    in_specs = [
        pl.BlockSpec((B, H, W, C), lambda i: (0, 0, 0, 0)),        # x (resident)
        pl.BlockSpec((2 * C, HEAD_TN), lambda i: (0, i)),          # w1 slab
        pl.BlockSpec((1, HEAD_TN), lambda i: (0, i)),              # b1 slab
        pl.BlockSpec((HEAD_TN, EMB), lambda i: (i, 0)),            # w2 slab
        pl.BlockSpec((1, EMB), lambda i: (0, 0)),                  # b2
        pl.BlockSpec((EMB, NUM_CLASSES), lambda i: (0, 0)),        # arc weight
    ]
    args = [x, p["head_w1"], p["head_b1"], p["head_w2"], p["head_b2"],
            p["arc_w"]]
    if label is not None:
        in_specs.append(pl.BlockSpec((B, 1), lambda i: (0, 0)))
        args.append(label.astype(jnp.int32).reshape(B, 1))
    out_specs = (pl.BlockSpec((B, EMB), lambda i: (0, 0)),
                 pl.BlockSpec((B, NUM_CLASSES), lambda i: (0, 0)))
    return pl.pallas_call(
        functools.partial(_tail_kernel, **consts),
        out_shape=(jax.ShapeDtypeStruct((B, EMB), jnp.float32),
                   jax.ShapeDtypeStruct((B, NUM_CLASSES), jnp.float32)),
        grid=(NB,),
        in_specs=in_specs,
        out_specs=out_specs,
        scratch_shapes=[pltpu.VMEM((B, 2 * C), jnp.float32),   # pooled feats
                        pltpu.VMEM((B, EMB), jnp.float32)],    # e accumulator
        compiler_params=pltpu.CompilerParams(
            dimension_semantics=("arbitrary",),
            vmem_limit_bytes=_VMEM_LIMIT),
    )(*args)


# ----------------------------------------------------------------------------
# Plain-JAX glue (layout plumbing only)
# ----------------------------------------------------------------------------
# TODO(synk): im2col patch extraction and the 3x3/stride-2 max-pool remain
# XLA-side glue; at production batch/resolution they should move inside a
# Pallas conv kernel to avoid the 49x HBM blow-up.
def _im2col(x, K, stride, pad):
    B, H, W, C = x.shape
    xp = jnp.pad(x, ((0, 0), (pad, pad), (pad, pad), (0, 0)))
    Ho = (H + 2 * pad - K) // stride + 1
    Wo = (W + 2 * pad - K) // stride + 1
    cols = []
    for dh in range(K):
        for dw in range(K):
            cols.append(xp[:, dh:dh + (Ho - 1) * stride + 1:stride,
                           dw:dw + (Wo - 1) * stride + 1:stride, :])
    patches = jnp.concatenate(cols, axis=-1).reshape(B * Ho * Wo, K * K * C)
    return patches, (B, Ho, Wo)


def _maxpool_3x3_s2_p1(x):
    B, H, W, C = x.shape
    xp = jnp.pad(x, ((0, 0), (1, 1), (1, 1), (0, 0)),
                 constant_values=-jnp.inf)
    Ho = (H + 2 - 3) // 2 + 1
    Wo = (W + 2 - 3) // 2 + 1
    out = None
    for dh in range(3):
        for dw in range(3):
            s = xp[:, dh:dh + (Ho - 1) * 2 + 1:2, dw:dw + (Wo - 1) * 2 + 1:2, :]
            out = s if out is None else jnp.maximum(out, s)
    return out


def _conv1x1(x, w, b, stride):
    if stride == 2:
        x = x[:, ::2, ::2, :]
    B, H, W, Cin = x.shape
    y = matmul_bias_act(x.reshape(B * H * W, Cin), w, b, relu=True)
    return y.reshape(B, H, W, -1)


# ----------------------------------------------------------------------------
# Deterministic parameter init (synthetic; eval-mode BN folded; bf16 weights)
# ----------------------------------------------------------------------------
def init_params(key):
    keys = iter(jax.random.split(key, 64))
    s_bn = 1.0 / math.sqrt(1.0 + BN_EPS)   # BN with identity running stats

    def nrm(shape, fan_in):
        return jax.random.normal(next(keys), shape, jnp.float32) / math.sqrt(fan_in)

    p = {}
    # conv1 (7x7 s2, 3->64) + bn1 folded, padded to (256, 128) for lane density
    w = nrm((147, 64), 147) * s_bn
    w = jnp.pad(w, ((0, CONV1_KPAD - 147), (0, CONV1_CPAD - 64)))
    p["conv1_w"] = w.astype(jnp.bfloat16)
    p["conv1_b"] = jnp.zeros((1, CONV1_CPAD), jnp.float32)

    # layer stand-ins (1x1 convs + folded BN)
    # TODO(synk): real ResNet152 bottleneck stacks not reproduced.
    for name, cin, cout, cin_pad in (("layer1", 64, 256, CONV1_CPAD),
                                     ("layer2", 256, 512, 256),
                                     ("layer3", 512, 1024, 512),
                                     ("layer4", 1024, 2048, 1024)):
        w = nrm((cin, cout), cin) * s_bn
        if cin_pad != cin:
            w = jnp.pad(w, ((0, cin_pad - cin), (0, 0)))
        p[name + "_w"] = w.astype(jnp.bfloat16)
        p[name + "_b"] = jnp.zeros((1, cout), jnp.float32)

    def att_params(C):
        hid = C // 16
        wsp = nrm((49, C), 49 * C) * s_bn                     # BatchNorm2d(1) fold
        wsp_t = jnp.pad(wsp.T, ((0, 0), (0, ATT_HID_PAD - 49)))   # (C, 128)
        w1 = jnp.pad(nrm((C, hid), C), ((0, 0), (0, ATT_HID_PAD - hid)))
        w2 = jnp.pad(nrm((hid, C), hid), ((0, ATT_HID_PAD - hid), (0, 0)))
        return {
            "wsp_t": wsp_t.astype(jnp.bfloat16),
            "bsp": jnp.zeros((1, 1), jnp.float32),
            "w1": w1.astype(jnp.bfloat16),
            "b1": jnp.zeros((1, ATT_HID_PAD), jnp.float32),
            "w2": w2.astype(jnp.bfloat16),
            "b2": jnp.zeros((1, C), jnp.float32),
        }

    p["att1"] = att_params(512)
    p["att2"] = att_params(1024)
    p["att3"] = att_params(2048)

    # embedding head: Linear(4096,1024)+BN, Linear(1024,EMB)+BN (BN folded)
    p["head_w1"] = (nrm((4096, 1024), 4096) * s_bn).astype(jnp.bfloat16)
    p["head_b1"] = jnp.zeros((1, 1024), jnp.float32)
    p["head_w2"] = (nrm((1024, EMB), 1024) * s_bn).astype(jnp.bfloat16)
    p["head_b2"] = jnp.zeros((1, EMB), jnp.float32)

    # ArcMargin weight, stored transposed: (EMB, NUM_CLASSES), kept f32
    p["arc_w"] = jax.random.normal(next(keys), (EMB, NUM_CLASSES),
                                   jnp.float32) * math.sqrt(2.0 / (EMB + NUM_CLASSES))
    return p


# ----------------------------------------------------------------------------
# Forward pass (mirrors FaceRecognitionModel.forward)
# ----------------------------------------------------------------------------
def forward(x_nchw, params, label=None):
    x = jnp.transpose(x_nchw, (0, 2, 3, 1)).astype(jnp.float32)  # NCHW -> NHWC

    # i=0..2: conv1 + bn1 + relu (lane-dense im2col matmul, padded 147->256/64->128)
    patches, (B, Ho, Wo) = _im2col(x, K=7, stride=2, pad=3)
    patches = jnp.pad(patches, ((0, 0), (0, CONV1_KPAD - patches.shape[1])))
    x = matmul_bias_act(patches, params["conv1_w"], params["conv1_b"],
                        relu=True).reshape(B, Ho, Wo, CONV1_CPAD)
    # i=3: maxpool (extra padded channels stay exactly zero)
    x = _maxpool_3x3_s2_p1(x)
    # i=4: layer1 stand-in
    x = _conv1x1(x, params["layer1_w"], params["layer1_b"], stride=1)

    features = []
    # i=5: layer2 stand-in + attention1 (512 ch)
    x = _conv1x1(x, params["layer2_w"], params["layer2_b"], stride=2)
    x = attention_module(x, params["att1"])
    features.append(x)
    # i=6: layer3 stand-in + attention2 (1024 ch)
    x = _conv1x1(x, params["layer3_w"], params["layer3_b"], stride=2)
    x = attention_module(x, params["att2"])
    features.append(x)
    # i=7: layer4 stand-in + attention3 (2048 ch)
    x = _conv1x1(x, params["layer4_w"], params["layer4_b"], stride=2)
    x = attention_module(x, params["att3"])
    features.append(x)

    # Fused: GAP+GMP pool -> embedding MLP -> L2 norm -> ArcMargin
    # TODO(synk): the layer4 1x1 conv + attention3 are not fused into this
    # tail kernel (kept separate to keep the spatial pad in XLA-land).
    embedding, output = tail_pool_embed_arcface(x, params, label)
    return {"embedding": embedding, "output": output, "features": features}


if __name__ == "__main__":
    key = jax.random.PRNGKey(0)
    kx, kl, kp = jax.random.split(key, 3)
    x = jax.random.normal(kx, (2, 3, 64, 64), jnp.float32)     # NCHW input
    label = jax.random.randint(kl, (2,), 0, NUM_CLASSES)
    params = init_params(kp)

    out_infer = forward(x, params)           # label=None -> raw cosine logits
    out_train = forward(x, params, label)    # with label  -> ArcFace logits
    jax.block_until_ready(out_infer)
    jax.block_until_ready(out_train)

    assert out_infer["embedding"].shape == (2, EMB)
    assert out_infer["output"].shape == (2, NUM_CLASSES)
    assert out_train["output"].shape == (2, NUM_CLASSES)
    assert len(out_train["features"]) == 3
    assert out_train["features"][0].shape == (2, 8, 8, 512)
    assert bool(jnp.all(jnp.isfinite(out_train["output"])))
    assert bool(jnp.all(jnp.isfinite(out_infer["output"])))
    print("KERNEL_OK")
</pallas_src>

<mosaic_0001>
module attributes {stable_mosaic.version = 11 : i64} {
  func.func @_matmul_bias_act_kernel(%arg0: i32, %arg1: memref<512x256xf32, #tpu.memory_space<vmem>>, %arg2: memref<256x128xbf16, #tpu.memory_space<vmem>>, %arg3: memref<1x128xf32, #tpu.memory_space<vmem>>, %arg4: memref<512x128xf32, #tpu.memory_space<vmem>>) attributes {dimension_semantics = [#tpu.dimension_semantics<parallel>], iteration_bounds = array<i64: 4>, scalar_prefetch = 0 : i64, scratch_operands = 0 : i64, tpu.core_type = #tpu.core_type<tc>, window_params = [{transform_indices = @transform_0, window_bounds = array<i64: 512, 256>}, {pipeline_mode = #tpu.pipeline_mode<synchronous>, transform_indices = @transform_1, window_bounds = array<i64: 256, 128>}, {pipeline_mode = #tpu.pipeline_mode<synchronous>, transform_indices = @transform_2, window_bounds = array<i64: 1, 128>}, {transform_indices = @transform_3, window_bounds = array<i64: 512, 128>}]} {
    %c0 = arith.constant 0 : index
    %c0_0 = arith.constant 0 : index
    %0 = vector.load %arg1[%c0, %c0_0] : memref<512x256xf32, #tpu.memory_space<vmem>>, vector<512x256xf32>
    %1 = arith.truncf %0 : vector<512x256xf32> to vector<512x256xbf16>
    %c0_1 = arith.constant 0 : index
    %c0_2 = arith.constant 0 : index
    %2 = vector.load %arg2[%c0_1, %c0_2] : memref<256x128xbf16, #tpu.memory_space<vmem>>, vector<256x128xbf16>
    %cst = arith.constant dense<0.000000e+00> : vector<512x128xf32>
    %3 = tpu.matmul %1, %2, %cst {dimension_numbers = #tpu.dot_dimension_numbers<[1], [0], [0], [1], [0, 0, 1, 1], [], []>} : vector<512x256xbf16>, vector<256x128xbf16>, vector<512x128xf32> -> vector<512x128xf32>
    %c0_3 = arith.constant 0 : index
    %c0_4 = arith.constant 0 : index
    %4 = vector.load %arg3[%c0_3, %c0_4] : memref<1x128xf32, #tpu.memory_space<vmem>>, vector<1x128xf32>
    %5 = vector.broadcast %4 : vector<1x128xf32> to vector<512x128xf32>
    %6 = arith.addf %3, %5 : vector<512x128xf32>
    %cst_5 = arith.constant 0.000000e+00 : f32
    %7 = vector.broadcast %cst_5 : f32 to vector<512x128xf32>
    %8 = arith.maximumf %6, %7 : vector<512x128xf32>
    %c0_6 = arith.constant 0 : index
    %c0_7 = arith.constant 0 : index
    %9 = vector.load %arg4[%c0_6, %c0_7] : memref<512x128xf32, #tpu.memory_space<vmem>>, vector<512x128xf32>
    tpu.vector_store %arg4[%c0_6, %c0_7], %8 {strides = array<i32>} : memref<512x128xf32, #tpu.memory_space<vmem>>, vector<512x128xf32>,
    return
  }
  func.func @transform_0(%arg0: i32) -> (i32, i32) {
    %c0_i32 = arith.constant 0 : i32
    %c0_i32_0 = arith.constant 0 : i32
    return %arg0, %c0_i32 : i32, i32
  }
  func.func @transform_1(%arg0: i32) -> (i32, i32) {
    %c0_i32 = arith.constant 0 : i32
    %c0_i32_0 = arith.constant 0 : i32
    %c0_i32_1 = arith.constant 0 : i32
    return %c0_i32, %c0_i32_0 : i32, i32
  }
  func.func @transform_2(%arg0: i32) -> (i32, i32) {
    %c0_i32 = arith.constant 0 : i32
    %c0_i32_0 = arith.constant 0 : i32
    %c0_i32_1 = arith.constant 0 : i32
    return %c0_i32, %c0_i32_0 : i32, i32
  }
  func.func @transform_3(%arg0: i32) -> (i32, i32) {
    %c0_i32 = arith.constant 0 : i32
    %c0_i32_0 = arith.constant 0 : i32
    return %arg0, %c0_i32 : i32, i32
  }
}

</mosaic_0001>

<bundles_post_ra>
// kernel: tpu_custom_call.1
= control target key start
LH: loop header
LB: loop body
LE: loop exit
PB: predicated region body
PF: predicated region fallthrough
CT: control target
= control target key end

     0   :  { %8 = vsyncpa [#allocation3], 0  ;;  %s1894_s0 = inlined_call_operand.hbm [shape: f32[2048,256], index: 0, kind: input, shape index: {}]   ;;  %s1895_s1 = inlined_call_operand.hbm [shape: bf16[256,128], index: 1, kind: input, shape index: {}]   ;;  %s1896_s2 = inlined_call_operand.hbm [shape: f32[1,128], index: 2, kind: input, shape index: {}]   ;;  %s1897_s3 = inlined_call_operand.hbm [shape: f32[2048,128], index: 3, kind: output, shape index: {}]  }
   0x1   :  { %10 = vsyncpa [#allocation3 + $0x1], 0 }
   0x2   :  { %11 = vsyncpa [#allocation6], 0 }
   0x3   :  { %12 = vsyncpa [#allocation4], 0 }
   0x4   :  { %14 = vsyncpa [#allocation4 + $0x1], 0  ;;  %s1412_s12 = smov 0   ;;  %s1414_s13 = smov 0  }
   0x5   :  { %s1416_s14 = smov 0   ;;  %s1418_s15 = smov 0  }
   0x6 LB: > { %s1433_s16 = sadd.s32 4294967295, %s1379_s15   ;;  %s1070_s17 = sadd.s32 4294967294, %s1379_s15   ;;  %s1379_s15 = sphi %s1418_s15, %s1918_s15   ;;  %s1375_s14 = sphi %s1416_s14, %s1917_s14   ;;  %s1371_s13 = sphi %s1414_s13, %s1916_s13   ;;  %s1367_s12 = sphi %s1412_s12, %s1915_s12  }
   0x7   : > { %p40_p0 = scmp.ne.s32.totalorder %s1371_s13, %s1367_s12  ;;  %p1898_p1 = scmp.eq.s32.totalorder %s1433_s16, 0 }
   0x8   : > { %p112_p3 = scmp.eq.s32.totalorder %s1070_s17, 3  ;;  %p1071_p5 = scmp.ge.s32.totalorder %s1379_s15, 1 }
   0x9   : > { %p1442_p4 = por %p1898_p1, %p40_p0  ;;  %p119_p7 = scmp.lt.s32.totalorder %s1379_s15, 5 }
   0xa   : > { %p1447_p6 = por %p112_p3, %p40_p0  ;;  %s1381_s21 = smov [#allocation5]  }
   0xb   : > { %s1902_s18 = scalar_select %p1442_p4, 1, 0 }
   0xc   : > { %s1903_s19 = scalar_select %p1447_p6, 1, 0 }
   0xd   : > { %p1452_p8 = pnand %p1071_p5, %p119_p7  ;;  %s131_s22 = sshll.u32 %s1381_s21, 4  ;;  %s132_s22 = int_to_ptr.vmem [resolvable:$true] %s131_s22 }
   0xe   : > { %s1382_s24 = smov [#allocation7]   ;;  %s1242_s26 = scalar_lea.vmem %s132_s22, 2048 }
   0xf   : > { %s1904_s20 = scalar_select %p1452_p8, 1, 0 }
  0x10   : > { %p1153_p9 = pneg %p1452_p8  ;;  %s145_s25 = sshll.u32 %s1382_s24, 4  ;;  %s146_s25 = int_to_ptr.vmem [resolvable:$true] %s145_s25 }
  0x11   : > { %p1243_p12 = scmp.ne.s32.totalorder %s132_s22, %s1242_s26  ;;  %p1250_p3 = scmp.lt.s32.totalorder %s132_s22, %s132_s22 }
  0x12   : > { %p1460_p10 = pnand %p1153_p9, %p1898_p1  ;;  %p1251_p5 = scmp.lt.s32.totalorder %s1242_s26, %s1242_s26 }
  0x14   : > { %p1233_p11 = pneg %p1460_p10  ;;  %p1252_p7 = por %p1251_p5, %p1250_p3 }
  0x16   : > { %p1245_p13 = pnand %p1243_p12, %p1233_p11 }
  0x18   : > { %p1246_p0 = pneg %p1245_p13 }
  0x1a   : > { %p1253_p9 = pnand %p1252_p7, %p1246_p0 }
  0x1c   : > { %1256 = shalt.err (!%p1253_p9)
}
  0x1d   : > { %s1383_s27 = smov 64   ;;  %s1384_s28 = smov 4  }
  0x1e   : > { %1156 = dma.hbm_to_vmem [thread:$0]  (!%p1460_p10), %s1895_s1, 2048, %s132_s22, [#allocation6], %s1383_s27, %s1383_s27, %s1384_s28  }
  0x1f   : > { %s1268_s4 = scalar_lea.vmem %s146_s25, 16  ;;  %s1275_s5 = scalar_lea.vmem %s146_s25, 32 }
  0x20   : > { %p1269_p1 = scmp.ne.s32.totalorder %s146_s25, %s1268_s4  ;;  %p1276_p2 = scmp.lt.s32.totalorder %s146_s25, %s146_s25 }
  0x21   : > { %p1277_p3 = scmp.lt.s32.totalorder %s1275_s5, %s1268_s4 }
  0x22   : > { %p1271_p12 = pnand %p1269_p1, %p1233_p11 }
  0x23   : > { %p1278_p0 = por %p1277_p3, %p1276_p2 }
  0x24   : > { %p1272_p13 = pneg %p1271_p12 }
  0x26   : > { %p1279_p5 = pnand %p1278_p0, %p1272_p13 }
  0x28   : > { %1282 = shalt.err (!%p1279_p5)
}
  0x29   : > { %1159 = dma.hbm_to_vmem [thread:$0]  (!%p1460_p10), %s1896_s2, 16, %s146_s25, [#allocation6]  }
  0x2a   : > { %s1483_s8 = sadd.s32 1, %s1379_s15   ;;  %s27_s9 = sadd.s32 1, %s1375_s14 }
  0x2b   : > { %s24_s10 = ssub.s32 %s1379_s15, %s1483_s8  ;;  %p34_p1 = scmp.ne.s32.totalorder %s1375_s14, %s1371_s13 }
  0x2c   : > { %p25_p2 = scmp.eq.s32.totalorder %s24_s10, 0  ;;  %p35_p11 = scmp.eq.s32.totalorder %s1379_s15, 0 }
  0x2d   : > { %p1906_p7 = scmp.eq.s32.totalorder %s1433_s16, 3  ;;  %p1170_p12 = scmp.lt.s32.totalorder %s1379_s15, 4 }
  0x2e   : > { %s1499_s17 = scalar_select %p25_p2, %s1375_s14, %s27_s9  }
  0x2f   : > { %p1493_p9 = por %p1906_p7, %p34_p1  ;;  %p36_p13 = por %p35_p11, %p34_p1 }
  0x30   : > { %s156_s21 = sand.u32 1, %s1375_s14   ;;  %s1107_s23 = sshll.u32 %s1379_s15, 14 }
  0x31   : > { %s1907_s11 = scalar_select %p1493_p9, 1, 0 }
  0x32   : > { %s1075_s22 = sshll.u32 %s156_s21, 10  ;;  %s1506_s26 = scalar_lea.hbm %s1894_s0, %s1107_s23 }
  0x33   : > { %s160_s27 = scalar_lea.vmem [#allocation2], %s1075_s22  ;;  %p1510_p10 = pnand %p1170_p12, %p36_p13 }
  0x34   : > { %s168_s28 = sshll.u32 %s160_s27, 4  ;;  %s1514_s30 = scalar_lea.sflag [#allocation3], %s156_s21  ;;  %s1508_s28 = int_to_ptr.vmem [resolvable:$true] %s168_s28 }
  0x35   : > { %s1283_s4 = scalar_lea.hbm %s1506_s26, 16384  ;;  %p1285_p0 = pneg %p1510_p10 }
  0x36   : > { %p1284_p3 = scmp.ne.s32.totalorder %s1506_s26, %s1283_s4  ;;  %s1288_s7 = scalar_lea.hbm %s1894_s0, 65536 }
  0x37   : > { %p1289_p2 = scmp.lt.s32.totalorder %s1506_s26, %s1894_s0  ;;  %p1290_p11 = scmp.lt.s32.totalorder %s1288_s7, %s1283_s4 }
  0x38   : > { %p1286_p5 = pnand %p1285_p0, %p1284_p3 }
  0x39   : > { %p1291_p7 = por %p1290_p11, %p1289_p2 }
  0x3a   : > { %p1287_p1 = pneg %p1286_p5 }
  0x3c   : > { %p1292_p12 = pnand %p1291_p7, %p1287_p1 }
  0x3e   : > { %1295 = shalt.err (!%p1292_p12)
}
  0x3f   : > { %s1296_s21 = scalar_lea.vmem %s1508_s28, 16384  ;;  %s1385_s22 = smov [#allocation2]  }
  0x40   : > { %p1297_p13 = scmp.ne.s32.totalorder %s1508_s28, %s1296_s21  ;;  %s1301_s23 = sshll.u32 %s1385_s22, 4  ;;  %s1302_s23 = int_to_ptr.vmem [resolvable:$false] %s1301_s23 }
  0x41   : > { %s1303_s24 = scalar_lea.vmem %s1302_s23, 32768  ;;  %p1304_p5 = scmp.lt.s32.totalorder %s1508_s28, %s1302_s23 }
  0x42   : > { %p1299_p6 = pnand %p1297_p13, %p1285_p0  ;;  %p1305_p9 = scmp.lt.s32.totalorder %s1303_s24, %s1296_s21 }
  0x44   : > { %p1300_p3 = pneg %p1299_p6  ;;  %p1306_p4 = por %p1305_p9, %p1304_p5 }
  0x46   : > { %p1307_p8 = pnand %p1306_p4, %p1300_p3 }
  0x48   : > { %1310 = shalt.err (!%p1307_p8)
}
  0x49   : > { %s1386_s25 = smov 256   ;;  %s1387_s27 = smov 16  }
  0x4a   : > { %1163 = dma.hbm_to_vmem [thread:$0]  (!%p1510_p10), %s1506_s26, 16384, %s1508_s28, %s1514_s30, %s1386_s25, %s1386_s25, %s1387_s27  }
  0x4b   : > { %p1909_p0 = scmp.ne.s32.totalorder %s1904_s20, 0 }
  0x4c   : > { %s1538_s4 = sand.u32 (!%p1909_p0), 1, %s1371_s13   ;;  %p1910_p4 = scmp.ne.s32.totalorder (!%p1909_p0), %s1902_s18, 0 }
  0x4d   : > { %180 = sbr.rel (%p1909_p0) target bundleno = 486 (0x1e6), region = 32  ;;  %s1080_s5 = sshll.u32 (!%p1909_p0), %s1538_s4, 10 }
  0x4e   : > { %s183_s6 = scalar_lea.sflag (!%p1909_p0), [#allocation3], %s1538_s4  ;;  %s1542_s7 = scalar_lea.vmem (!%p1909_p0), [#allocation2], %s1080_s5 }
  0x52   : > { %1354 = dma.done.wait (%p1910_p4), %s183_s6, 16384  }
  0x53   : > { %1356 = vsyncadd (%p1910_p4), %s183_s6, 4294950912  ;;  %p1911_p6 = scmp.eq.s32.totalorder %s1433_s16, 0 }
  0x55   : > { %1358 = dma.done.wait (%p1911_p6), [#allocation6], 2064   ;;  %p1912_p8 = pmov %p1911_p6 }
  0x56   : > { %v1388_v0 = vmov 0   ;;  %v1215_v1 = vld [vmem:[#allocation5 + $0x38] sm:$0xff]   ;;  %v1216_v2 = vld [vmem:[#allocation5 + $0x30] sm:$0xff]   ;;  %v1217_v3 = vld [vmem:[#allocation5 + $0x28] sm:$0xff]   ;;  %s1083_s18 = sshll.u32 %s1538_s4, 9  ;;  %s1108_s26 = sshll.u32 %s1433_s16, 13 }
  0x57   : > { %1360 = vsyncadd (%p1912_p8), [#allocation6], 4294965232  ;;  %547 = vmatprep.subr.bf16.mxu0 %v1388_v0  ;;  %1109 = vmatprep.subr.bf16.mxu1 %v1388_v0  ;;  %v1218_v4 = vld [vmem:[#allocation5 + $0x20] sm:$0xff]   ;;  %v1219_v5 = vld [vmem:[#allocation5 + $0x18] sm:$0xff]   ;;  %s1717_s20 = scalar_lea.vmem [#allocation8], %s1083_s18  ;;  %s1848_s9 = scalar_lea.hbm %s1897_s3, %s1108_s26 }
  0x58   : > { %548 = vmatpush1.bf16.msra.mxu0 %v1215_v1  ;;  %1125 = vmatpush1.bf16.msra.mxu1 %v1215_v1  ;;  %v221_v6 = vld [vmem:[%s1542_s7 + $0x8] sm:$0xff]  ;;  %v223_v7 = vld [vmem:[%s1542_s7 + $0x18] sm:$0xff]  ;;  %v1220_v11 = vld [vmem:[#allocation5 + $0x10] sm:$0xff]   ;;  %s978_s28 = sshll.u32 %s1717_s20, 4  ;;  %s965_s16 = scalar_lea.sflag [#allocation4], %s1538_s4  ;;  %s1850_s28 = int_to_ptr.vmem [resolvable:$true] %s978_s28 }
  0x59   : > { %549 = vmatprep.subr.bf16.mxu0 %v1388_v0  ;;  %1110 = vmatprep.subr.bf16.mxu1 %v1388_v0  ;;  %v285_v8 = vld [vmem:[%s1542_s7 + $0x208] sm:$0xff]  ;;  %v349_v9 = vpack.c.bf16 %v223_v7, %v221_v6  ;;  %v287_v10 = vld [vmem:[%s1542_s7 + $0x218] sm:$0xff]  ;;  %v1222_v14 = vld [vmem:[#allocation5] sm:$0xff]   ;;  %s1311_s10 = scalar_lea.vmem %s1850_s28, 8192  ;;  %p1913_p10 = scmp.ne.s32.totalorder %s1907_s11, 0 }
  0x5a   : > { %v381_v12 = vpack.c.bf16 %v287_v10, %v285_v8  ;;  %v1221_v13 = vld [vmem:[#allocation5 + $0x8] sm:$0xff]   ;;  %v1223_v15 = vld [vmem:[#allocation5 + $0x78] sm:$0xff]   ;;  %v1224_v16 = vld [vmem:[#allocation5 + $0x70] sm:$0xff]   ;;  %p1312_p9 = scmp.ne.s32.totalorder %s1850_s28, %s1311_s10  ;;  %s1389_s21 = smov [#allocation8]  }
  0x5b   : > { %579 = vmatprep.mubr.bf16.mxu0 %v349_v9  ;;  %v1225_v17 = vld [vmem:[#allocation5 + $0x68] sm:$0xff]   ;;  %v1226_v18 = vld [vmem:[#allocation5 + $0x60] sm:$0xff]   ;;  %v1227_v19 = vld [vmem:[#allocation5 + $0x58] sm:$0xff]   ;;  %s1315_s22 = sshll.u32 %s1389_s21, 4  ;;  %s1316_s22 = int_to_ptr.vmem [resolvable:$false] %s1315_s22 }
  0x5c   : > { %550 = vmatpush1.bf16.msra.mxu0 %v1216_v2  ;;  %1126 = vmatpush1.bf16.msra.mxu1 %v1216_v2  ;;  %v1228_v20 = vld [vmem:[#allocation5 + $0x50] sm:$0xff]   ;;  %v1229_v21 = vld [vmem:[#allocation5 + $0x48] sm:$0xff]   ;;  %v1230_v22 = vld [vmem:[#allocation5 + $0x40] sm:$0xff]   ;;  %p1313_p1 = pnand %p1312_p9, %p1913_p10  ;;  %s1317_s23 = scalar_lea.vmem %s1316_s22, 16384 }
  0x5d   : > { %551 = vmatprep.subr.bf16.mxu0 %v1388_v0  ;;  %1111 = vmatprep.subr.bf16.mxu1 %v1388_v0  ;;  %v220_v23 = vld [vmem:[%s1542_s7] sm:$0xff]  ;;  %v222_v24 = vld [vmem:[%s1542_s7 + $0x10] sm:$0xff]  ;;  %v225_v27 = vld [vmem:[%s1542_s7 + $0x28] sm:$0xff]  ;;  %p1318_p11 = scmp.lt.s32.totalorder %s1850_s28, %s1316_s22  ;;  %p1319_p7 = scmp.lt.s32.totalorder %s1317_s23, %s1311_s10 }
  0x5e   : > { %707 = vmatprep.mubr.bf16.mxu1 %v381_v12  ;;  %v284_v25 = vld [vmem:[%s1542_s7 + $0x200] sm:$0xff]  ;;  %v286_v26 = vld [vmem:[%s1542_s7 + $0x210] sm:$0xff]  ;;  %v227_v28 = vld [vmem:[%s1542_s7 + $0x38] sm:$0xff]  ;;  %v348_v31 = vpack.c.bf16 %v222_v24, %v220_v23  ;;  %p1314_p2 = pneg %p1313_p1 }
  0x5f   : > { %v289_v29 = vld [vmem:[%s1542_s7 + $0x228] sm:$0xff]  ;;  %v291_v30 = vld [vmem:[%s1542_s7 + $0x238] sm:$0xff]  ;;  %v380_v32 = vpack.c.bf16 %v286_v26, %v284_v25  ;;  %v351_v33 = vpack.c.bf16 %v227_v28, %v225_v27  ;;  %v224_v35 = vld [vmem:[%s1542_s7 + $0x20] sm:$0xff]  ;;  %p1320_p12 = por %p1319_p7, %p1318_p11 }
  0x60   : > { %552 = vmatpush1.bf16.msra.mxu0 %v1217_v3  ;;  %1127 = vmatpush1.bf16.msra.mxu1 %v1217_v3  ;;  %v383_v34 = vpack.c.bf16 %v291_v30, %v289_v29  ;;  %v226_v36 = vld [vmem:[%s1542_s7 + $0x30] sm:$0xff]  ;;  %v288_v37 = vld [vmem:[%s1542_s7 + $0x220] sm:$0xff]  ;;  %v229_v39 = vld [vmem:[%s1542_s7 + $0x48] sm:$0xff] }
  0x61   : > { %553 = vmatprep.subr.bf16.mxu0 %v1388_v0  ;;  %1112 = vmatprep.subr.bf16.mxu1 %v1388_v0  ;;  %v290_v38 = vld [vmem:[%s1542_s7 + $0x230] sm:$0xff]  ;;  %v231_v40 = vld [vmem:[%s1542_s7 + $0x58] sm:$0xff]  ;;  %v293_v41 = vld [vmem:[%s1542_s7 + $0x248] sm:$0xff]  ;;  %v350_v43 = vpack.c.bf16 %v226_v36, %v224_v35  ;;  %p1321_p13 = pnand %p1320_p12, %p1314_p2 }
  0x62   : > { %v295_v42 = vld [vmem:[%s1542_s7 + $0x258] sm:$0xff]  ;;  %v382_v44 = vpack.c.bf16 %v290_v38, %v288_v37  ;;  %v353_v45 = vpack.c.bf16 %v231_v40, %v229_v39  ;;  %v228_v47 = vld [vmem:[%s1542_s7 + $0x40] sm:$0xff]  ;;  %v230_v48 = vld [vmem:[%s1542_s7 + $0x50] sm:$0xff] }
  0x63   : > { %v385_v46 = vpack.c.bf16 %v295_v42, %v293_v41  ;;  %v292_v49 = vld [vmem:[%s1542_s7 + $0x240] sm:$0xff]  ;;  %v294_v50 = vld [vmem:[%s1542_s7 + $0x250] sm:$0xff]  ;;  %v233_v51 = vld [vmem:[%s1542_s7 + $0x68] sm:$0xff]  ;;  %v352_v55 = vpack.c.bf16 %v230_v48, %v228_v47 }
  0x64   : > { %554 = vmatpush1.bf16.msra.mxu0 %v1218_v4  ;;  %1128 = vmatpush1.bf16.msra.mxu1 %v1218_v4  ;;  %v235_v52 = vld [vmem:[%s1542_s7 + $0x78] sm:$0xff]  ;;  %v297_v53 = vld [vmem:[%s1542_s7 + $0x268] sm:$0xff]  ;;  %v384_v56 = vpack.c.bf16 %v294_v50, %v292_v49  ;;  %v232_v59 = vld [vmem:[%s1542_s7 + $0x60] sm:$0xff] }
  0x65   : > { %555 = vmatprep.subr.bf16.mxu0 %v1388_v0  ;;  %1113 = vmatprep.subr.bf16.mxu1 %v1388_v0  ;;  %v299_v54 = vld [vmem:[%s1542_s7 + $0x278] sm:$0xff]  ;;  %v355_v57 = vpack.c.bf16 %v235_v52, %v233_v51  ;;  %v234_v60 = vld [vmem:[%s1542_s7 + $0x70] sm:$0xff]  ;;  %v296_v61 = vld [vmem:[%s1542_s7 + $0x260] sm:$0xff] }
  0x66   : > { %v387_v58 = vpack.c.bf16 %v299_v54, %v297_v53  ;;  %v298_v62 = vld [vmem:[%s1542_s7 + $0x270] sm:$0xff]  ;;  %v237_v63 = vld [vmem:[%s1542_s7 + $0x88] sm:$0xff]  ;;  %v303_v2 = vld [vmem:[%s1542_s7 + $0x298] sm:$0xff]  ;;  %v354_v3 = vpack.c.bf16 %v234_v60, %v232_v59 }
  0x67   : > { %v301_v1 = vld [vmem:[%s1542_s7 + $0x288] sm:$0xff]  ;;  %v386_v4 = vpack.c.bf16 %v298_v62, %v296_v61  ;;  %v236_v7 = vld [vmem:[%s1542_s7 + $0x80] sm:$0xff]  ;;  %v238_v8 = vld [vmem:[%s1542_s7 + $0x90] sm:$0xff] }
  0x68   : > { %556 = vmatpush1.bf16.msra.mxu0 %v1219_v5  ;;  %1129 = vmatpush1.bf16.msra.mxu1 %v1219_v5  ;;  %v389_v6 = vpack.c.bf16 %v303_v2, %v301_v1  ;;  %v300_v9 = vld [vmem:[%s1542_s7 + $0x280] sm:$0xff]  ;;  %v302_v10 = vld [vmem:[%s1542_s7 + $0x290] sm:$0xff]  ;;  %v243_v12 = vld [vmem:[%s1542_s7 + $0xb8] sm:$0xff] }
  0x69   : > { %557 = vmatprep.subr.bf16.mxu0 %v1388_v0  ;;  %1114 = vmatprep.subr.bf16.mxu1 %v1388_v0  ;;  %v245_v23 = vld [vmem:[%s1542_s7 + $0xc8] sm:$0xff]  ;;  %v247_v24 = vld [vmem:[%s1542_s7 + $0xd8] sm:$0xff] }
  0x6a   : > { %v309_v25 = vld [vmem:[%s1542_s7 + $0x2c8] sm:$0xff]  ;;  %v311_v26 = vld [vmem:[%s1542_s7 + $0x2d8] sm:$0xff]  ;;  %v361_v29 = vpack.c.bf16 %v247_v24, %v245_v23 }
  0x6b   : > { %v393_v30 = vpack.c.bf16 %v311_v26, %v309_v25  ;;  %v249_v35 = vld [vmem:[%s1542_s7 + $0xe8] sm:$0xff]  ;;  %v251_v36 = vld [vmem:[%s1542_s7 + $0xf8] sm:$0xff] }
  0x6c   : > { %558 = vmatpush1.bf16.msra.mxu0 %v1220_v11  ;;  %1130 = vmatpush1.bf16.msra.mxu1 %v1220_v11  ;;  %v241_v11 = vld [vmem:[%s1542_s7 + $0xa8] sm:$0xff]  ;;  %v315_v38 = vld [vmem:[%s1542_s7 + $0x2f8] sm:$0xff]  ;;  %v363_v41 = vpack.c.bf16 %v251_v36, %v249_v35 }
  0x6d   : > { %559 = vmatprep.subr.bf16.mxu0 %v1388_v0  ;;  %1115 = vmatprep.subr.bf16.mxu1 %v1388_v0  ;;  %v313_v37 = vld [vmem:[%s1542_s7 + $0x2e8] sm:$0xff]  ;;  %v255_v48 = vld [vmem:[%s1542_s7 + $0x118] sm:$0xff] }
  0x6e   : > { %v395_v42 = vpack.c.bf16 %v315_v38, %v313_v37  ;;  %v253_v47 = vld [vmem:[%s1542_s7 + $0x108] sm:$0xff]  ;;  %v319_v50 = vld [vmem:[%s1542_s7 + $0x318] sm:$0xff] }
  0x6f   : > { %v317_v49 = vld [vmem:[%s1542_s7 + $0x308] sm:$0xff]  ;;  %v365_v53 = vpack.c.bf16 %v255_v48, %v253_v47  ;;  %v259_v60 = vld [vmem:[%s1542_s7 + $0x138] sm:$0xff] }
  0x70   : > { %560 = vmatpush1.bf16.msra.mxu0 %v1221_v13  ;;  %1131 = vmatpush1.bf16.msra.mxu1 %v1221_v13  ;;  %v305_v13 = vld [vmem:[%s1542_s7 + $0x2a8] sm:$0xff]  ;;  %v397_v54 = vpack.c.bf16 %v319_v50, %v317_v49  ;;  %v323_v62 = vld [vmem:[%s1542_s7 + $0x338] sm:$0xff] }
  0x71   : > { %561 = vmatprep.subr.bf16.mxu0 %v1388_v0  ;;  %1116 = vmatprep.subr.bf16.mxu1 %v1388_v0  ;;  %v257_v59 = vld [vmem:[%s1542_s7 + $0x128] sm:$0xff] }
  0x72   : > { %v321_v61 = vld [vmem:[%s1542_s7 + $0x328] sm:$0xff]  ;;  %v367_v1 = vpack.c.bf16 %v259_v60, %v257_v59 }
  0x73   : > { %v399_v2 = vpack.c.bf16 %v323_v62, %v321_v61 }
  0x74   : > { %562 = vmatpush1.bf16.msra.mxu0 %v1222_v14  ;;  %1132 = vmatpush1.bf16.msra.mxu1 %v1222_v14  ;;  %v307_v14 = vld [vmem:[%s1542_s7 + $0x2b8] sm:$0xff] }
  0x75   : > { %563 = vmatprep.subr.bf16.mxu0 %v1388_v0  ;;  %1117 = vmatprep.subr.bf16.mxu1 %v1388_v0 }
  0x78   : > { %564 = vmatpush2.bf16.msra.mxu0 %v1223_v15  ;;  %1133 = vmatpush2.bf16.msra.mxu1 %v1223_v15  ;;  %v356_v15 = vpack.c.bf16 %v238_v8, %v236_v7  ;;  %v261_v7 = vld [vmem:[%s1542_s7 + $0x148] sm:$0xff]  ;;  %v263_v8 = vld [vmem:[%s1542_s7 + $0x158] sm:$0xff] }
  0x79   : > { %565 = vmatprep.subr.bf16.mxu0 %v1388_v0  ;;  %1118 = vmatprep.subr.bf16.mxu1 %v1388_v0 }
  0x7c   : > { %566 = vmatpush2.bf16.msra.mxu0 %v1224_v16  ;;  %1134 = vmatpush2.bf16.msra.mxu1 %v1224_v16  ;;  %v388_v16 = vpack.c.bf16 %v302_v10, %v300_v9  ;;  %v325_v9 = vld [vmem:[%s1542_s7 + $0x348] sm:$0xff]  ;;  %v327_v10 = vld [vmem:[%s1542_s7 + $0x358] sm:$0xff] }
  0x7d   : > { %567 = vmatprep.subr.bf16.mxu0 %v1388_v0  ;;  %1119 = vmatprep.subr.bf16.mxu1 %v1388_v0 }
  0x80   : > { %568 = vmatpush2.bf16.msra.mxu0 %v1225_v17  ;;  %1135 = vmatpush2.bf16.msra.mxu1 %v1225_v17  ;;  %v359_v17 = vpack.c.bf16 %v243_v12, %v241_v11 }
  0x81   : > { %569 = vmatprep.subr.bf16.mxu0 %v1388_v0  ;;  %1120 = vmatprep.subr.bf16.mxu1 %v1388_v0 }
  0x84   : > { %570 = vmatpush2.bf16.msra.mxu0 %v1226_v18  ;;  %1136 = vmatpush2.bf16.msra.mxu1 %v1226_v18  ;;  %v391_v18 = vpack.c.bf16 %v307_v14, %v305_v13  ;;  %v369_v13 = vpack.c.bf16 %v263_v8, %v261_v7  ;;  %v401_v14 = vpack.c.bf16 %v327_v10, %v325_v9 }
  0x85   : > { %571 = vmatprep.subr.bf16.mxu0 %v1388_v0  ;;  %1121 = vmatprep.subr.bf16.mxu1 %v1388_v0 }
  0x88   : > { %572 = vmatpush2.bf16.msra.mxu0 %v1227_v19  ;;  %1137 = vmatpush2.bf16.msra.mxu1 %v1227_v19  ;;  %v240_v19 = vld [vmem:[%s1542_s7 + $0xa0] sm:$0xff] }
  0x89   : > { %573 = vmatprep.subr.bf16.mxu0 %v1388_v0  ;;  %1122 = vmatprep.subr.bf16.mxu1 %v1388_v0 }
  0x8c   : > { %574 = vmatpush2.bf16.msra.mxu0 %v1228_v20  ;;  %1138 = vmatpush2.bf16.msra.mxu1 %v1228_v20  ;;  %v242_v20 = vld [vmem:[%s1542_s7 + $0xb0] sm:$0xff] }
  0x8d   : > { %575 = vmatprep.subr.bf16.mxu0 %v1388_v0  ;;  %1123 = vmatprep.subr.bf16.mxu1 %v1388_v0  ;;  %v358_v27 = vpack.c.bf16 %v242_v20, %v240_v19  ;;  %v265_v19 = vld [vmem:[%s1542_s7 + $0x168] sm:$0xff]  ;;  %v267_v20 = vld [vmem:[%s1542_s7 + $0x178] sm:$0xff] }
  0x8e   : > { %v371_v25 = vpack.c.bf16 %v267_v20, %v265_v19 }
  0x90   : > { %576 = vmatpush2.bf16.msra.mxu0 %v1229_v21  ;;  %1139 = vmatpush2.bf16.msra.mxu1 %v1229_v21  ;;  %v304_v21 = vld [vmem:[%s1542_s7 + $0x2a0] sm:$0xff] }
  0x91   : > { %577 = vmatprep.subr.bf16.mxu0 %v1388_v0  ;;  %1124 = vmatprep.subr.bf16.mxu1 %v1388_v0  ;;  %v239_v0 = vld [vmem:[%s1542_s7 + $0x98] sm:$0xff] }
  0x92   : > { %v357_v5 = vpack.c.bf16 %v239_v0, %v237_v63 }
  0x94   : > { %578 = vmatpush2.bf16.msra.mxu0 %v1230_v22  ;;  %1140 = vmatpush2.bf16.msra.mxu1 %v1230_v22  ;;  %v306_v22 = vld [vmem:[%s1542_s7 + $0x2b0] sm:$0xff] }
  0x95   : > { %v390_v28 = vpack.c.bf16 %v306_v22, %v304_v21  ;;  %v329_v21 = vld [vmem:[%s1542_s7 + $0x368] sm:$0xff]  ;;  %v331_v22 = vld [vmem:[%s1542_s7 + $0x378] sm:$0xff] }
  0x96   : > { %v403_v26 = vpack.c.bf16 %v331_v22, %v329_v21 }
  0x97   : > { %580 = vmatmul.mubr.bf16.vlgmr.msra.gmra.mxu0 %v348_v31  ;;  %708 = vmatmul.mubr.bf16.vlgmr.msra.gmra.mxu1 %v380_v32  ;;  %v244_v31 = vld [vmem:[%s1542_s7 + $0xc0] sm:$0xff]  ;;  %v246_v32 = vld [vmem:[%s1542_s7 + $0xd0] sm:$0xff] }
  0x98   : > { %587 = vmatprep.mubr.bf16.mxu0 %v351_v33  ;;  %715 = vmatprep.mubr.bf16.mxu1 %v383_v34  ;;  %v308_v33 = vld [vmem:[%s1542_s7 + $0x2c0] sm:$0xff]  ;;  %v310_v34 = vld [vmem:[%s1542_s7 + $0x2d0] sm:$0xff]  ;;  %v360_v39 = vpack.c.bf16 %v246_v32, %v244_v31  ;;  %v269_v31 = vld [vmem:[%s1542_s7 + $0x188] sm:$0xff] }
  0x99   : > { %v392_v40 = vpack.c.bf16 %v310_v34, %v308_v33  ;;  %v271_v32 = vld [vmem:[%s1542_s7 + $0x198] sm:$0xff]  ;;  %v333_v33 = vld [vmem:[%s1542_s7 + $0x388] sm:$0xff] }
  0x9a   : > { %v335_v34 = vld [vmem:[%s1542_s7 + $0x398] sm:$0xff]  ;;  %v373_v37 = vpack.c.bf16 %v271_v32, %v269_v31 }
  0x9b   : > { %v405_v38 = vpack.c.bf16 %v335_v34, %v333_v33 }
  0x9f   : > { %588 = vmatmul.mubr.bf16.gmra.mxu0 %v350_v43  ;;  %716 = vmatmul.mubr.bf16.gmra.mxu1 %v382_v44  ;;  %v248_v43 = vld [vmem:[%s1542_s7 + $0xe0] sm:$0xff]  ;;  %v250_v44 = vld [vmem:[%s1542_s7 + $0xf0] sm:$0xff] }
  0xa0   : > { %595 = vmatprep.mubr.bf16.mxu0 %v353_v45  ;;  %723 = vmatprep.mubr.bf16.mxu1 %v385_v46  ;;  %v312_v45 = vld [vmem:[%s1542_s7 + $0x2e0] sm:$0xff]  ;;  %v314_v46 = vld [vmem:[%s1542_s7 + $0x2f0] sm:$0xff]  ;;  %v362_v51 = vpack.c.bf16 %v250_v44, %v248_v43  ;;  %v273_v43 = vld [vmem:[%s1542_s7 + $0x1a8] sm:$0xff] }
  0xa1   : > { %v394_v52 = vpack.c.bf16 %v314_v46, %v312_v45  ;;  %v275_v44 = vld [vmem:[%s1542_s7 + $0x1b8] sm:$0xff]  ;;  %v337_v45 = vld [vmem:[%s1542_s7 + $0x3a8] sm:$0xff] }
  0xa2   : > { %v339_v46 = vld [vmem:[%s1542_s7 + $0x3b8] sm:$0xff]  ;;  %v375_v49 = vpack.c.bf16 %v275_v44, %v273_v43 }
  0xa3   : > { %v407_v50 = vpack.c.bf16 %v339_v46, %v337_v45 }
  0xa7   : > { %596 = vmatmul.mubr.bf16.gmra.mxu0 %v352_v55  ;;  %724 = vmatmul.mubr.bf16.gmra.mxu1 %v384_v56  ;;  %v252_v55 = vld [vmem:[%s1542_s7 + $0x100] sm:$0xff]  ;;  %v254_v56 = vld [vmem:[%s1542_s7 + $0x110] sm:$0xff] }
  0xa8   : > { %603 = vmatprep.mubr.bf16.mxu0 %v355_v57  ;;  %731 = vmatprep.mubr.bf16.mxu1 %v387_v58  ;;  %v316_v57 = vld [vmem:[%s1542_s7 + $0x300] sm:$0xff]  ;;  %v318_v58 = vld [vmem:[%s1542_s7 + $0x310] sm:$0xff]  ;;  %v364_v63 = vpack.c.bf16 %v254_v56, %v252_v55  ;;  %v277_v55 = vld [vmem:[%s1542_s7 + $0x1c8] sm:$0xff] }
  0xa9   : > { %v396_v0 = vpack.c.bf16 %v318_v58, %v316_v57  ;;  %v279_v56 = vld [vmem:[%s1542_s7 + $0x1d8] sm:$0xff]  ;;  %v341_v57 = vld [vmem:[%s1542_s7 + $0x3c8] sm:$0xff] }
  0xaa   : > { %v343_v58 = vld [vmem:[%s1542_s7 + $0x3d8] sm:$0xff]  ;;  %v377_v61 = vpack.c.bf16 %v279_v56, %v277_v55 }
  0xab   : > { %v409_v62 = vpack.c.bf16 %v343_v58, %v341_v57 }
  0xaf   : > { %604 = vmatmul.mubr.bf16.gmra.mxu0 %v354_v3  ;;  %732 = vmatmul.mubr.bf16.gmra.mxu1 %v386_v4  ;;  %v256_v3 = vld [vmem:[%s1542_s7 + $0x120] sm:$0xff]  ;;  %v258_v4 = vld [vmem:[%s1542_s7 + $0x130] sm:$0xff] }
  0xb0   : > { %611 = vmatprep.mubr.bf16.mxu0 %v357_v5  ;;  %739 = vmatprep.mubr.bf16.mxu1 %v389_v6  ;;  %v320_v5 = vld [vmem:[%s1542_s7 + $0x320] sm:$0xff]  ;;  %v322_v6 = vld [vmem:[%s1542_s7 + $0x330] sm:$0xff]  ;;  %v366_v11 = vpack.c.bf16 %v258_v4, %v256_v3  ;;  %v281_v3 = vld [vmem:[%s1542_s7 + $0x1e8] sm:$0xff] }
  0xb1   : > { %v398_v12 = vpack.c.bf16 %v322_v6, %v320_v5  ;;  %v283_v4 = vld [vmem:[%s1542_s7 + $0x1f8] sm:$0xff]  ;;  %v345_v5 = vld [vmem:[%s1542_s7 + $0x3e8] sm:$0xff] }
  0xb2   : > { %v347_v6 = vld [vmem:[%s1542_s7 + $0x3f8] sm:$0xff]  ;;  %v379_v9 = vpack.c.bf16 %v283_v4, %v281_v3 }
  0xb3   : > { %v411_v10 = vpack.c.bf16 %v347_v6, %v345_v5 }
  0xb7   : > { %612 = vmatmul.mubr.bf16.gmra.mxu0 %v356_v15  ;;  %740 = vmatmul.mubr.bf16.gmra.mxu1 %v388_v16  ;;  %v260_v15 = vld [vmem:[%s1542_s7 + $0x140] sm:$0xff]  ;;  %v262_v16 = vld [vmem:[%s1542_s7 + $0x150] sm:$0xff] }
  0xb8   : > { %619 = vmatprep.mubr.bf16.mxu0 %v359_v17  ;;  %747 = vmatprep.mubr.bf16.mxu1 %v391_v18  ;;  %v324_v17 = vld [vmem:[%s1542_s7 + $0x340] sm:$0xff]  ;;  %v326_v18 = vld [vmem:[%s1542_s7 + $0x350] sm:$0xff]  ;;  %v368_v23 = vpack.c.bf16 %v262_v16, %v260_v15 }
  0xb9   : > { %v400_v24 = vpack.c.bf16 %v326_v18, %v324_v17  ;;  %v1712_v17 = vld [vmem:[#allocation7] ss:$0 sm:$0xff] }
  0xbf   : > { %620 = vmatmul.mubr.bf16.gmra.mxu0 %v358_v27  ;;  %748 = vmatmul.mubr.bf16.gmra.mxu1 %v390_v28  ;;  %v264_v27 = vld [vmem:[%s1542_s7 + $0x160] sm:$0xff]  ;;  %v266_v28 = vld [vmem:[%s1542_s7 + $0x170] sm:$0xff] }
  0xc0   : > { %627 = vmatprep.mubr.bf16.mxu0 %v361_v29  ;;  %755 = vmatprep.mubr.bf16.mxu1 %v393_v30  ;;  %v328_v29 = vld [vmem:[%s1542_s7 + $0x360] sm:$0xff]  ;;  %v330_v30 = vld [vmem:[%s1542_s7 + $0x370] sm:$0xff]  ;;  %v370_v35 = vpack.c.bf16 %v266_v28, %v264_v27 }
  0xc1   : > { %v402_v36 = vpack.c.bf16 %v330_v30, %v328_v29 }
  0xc7   : > { %628 = vmatmul.mubr.bf16.gmra.mxu0 %v360_v39  ;;  %756 = vmatmul.mubr.bf16.gmra.mxu1 %v392_v40  ;;  %v268_v39 = vld [vmem:[%s1542_s7 + $0x180] sm:$0xff]  ;;  %v270_v40 = vld [vmem:[%s1542_s7 + $0x190] sm:$0xff] }
  0xc8   : > { %635 = vmatprep.mubr.bf16.mxu0 %v363_v41  ;;  %763 = vmatprep.mubr.bf16.mxu1 %v395_v42  ;;  %v332_v41 = vld [vmem:[%s1542_s7 + $0x380] sm:$0xff]  ;;  %v334_v42 = vld [vmem:[%s1542_s7 + $0x390] sm:$0xff]  ;;  %v372_v47 = vpack.c.bf16 %v270_v40, %v268_v39 }
  0xc9   : > { %v404_v48 = vpack.c.bf16 %v334_v42, %v332_v41 }
  0xcf   : > { %636 = vmatmul.mubr.bf16.gmra.mxu0 %v362_v51  ;;  %764 = vmatmul.mubr.bf16.gmra.mxu1 %v394_v52  ;;  %v272_v51 = vld [vmem:[%s1542_s7 + $0x1a0] sm:$0xff]  ;;  %v274_v52 = vld [vmem:[%s1542_s7 + $0x1b0] sm:$0xff] }
  0xd0   : > { %643 = vmatprep.mubr.bf16.mxu0 %v365_v53  ;;  %771 = vmatprep.mubr.bf16.mxu1 %v397_v54  ;;  %v336_v53 = vld [vmem:[%s1542_s7 + $0x3a0] sm:$0xff]  ;;  %v338_v54 = vld [vmem:[%s1542_s7 + $0x3b0] sm:$0xff]  ;;  %v374_v59 = vpack.c.bf16 %v274_v52, %v272_v51 }
  0xd1   : > { %v406_v60 = vpack.c.bf16 %v338_v54, %v336_v53 }
  0xd7   : > { %644 = vmatmul.mubr.bf16.gmra.mxu0 %v364_v63  ;;  %772 = vmatmul.mubr.bf16.gmra.mxu1 %v396_v0  ;;  %v276_v63 = vld [vmem:[%s1542_s7 + $0x1c0] sm:$0xff]  ;;  %v278_v0 = vld [vmem:[%s1542_s7 + $0x1d0] sm:$0xff] }
  0xd8   : > { %651 = vmatprep.mubr.bf16.mxu0 %v367_v1  ;;  %779 = vmatprep.mubr.bf16.mxu1 %v399_v2  ;;  %v340_v1 = vld [vmem:[%s1542_s7 + $0x3c0] sm:$0xff]  ;;  %v342_v2 = vld [vmem:[%s1542_s7 + $0x3d0] sm:$0xff]  ;;  %v376_v7 = vpack.c.bf16 %v278_v0, %v276_v63 }
  0xd9   : > { %v408_v8 = vpack.c.bf16 %v342_v2, %v340_v1 }
  0xdf   : > { %652 = vmatmul.mubr.bf16.gmra.mxu0 %v366_v11  ;;  %780 = vmatmul.mubr.bf16.gmra.mxu1 %v398_v12  ;;  %v280_v11 = vld [vmem:[%s1542_s7 + $0x1e0] sm:$0xff]  ;;  %v282_v12 = vld [vmem:[%s1542_s7 + $0x1f0] sm:$0xff] }
  0xe0   : > { %659 = vmatprep.mubr.bf16.mxu0 %v369_v13  ;;  %787 = vmatprep.mubr.bf16.mxu1 %v401_v14  ;;  %v344_v13 = vld [vmem:[%s1542_s7 + $0x3e0] sm:$0xff]  ;;  %v346_v14 = vld [vmem:[%s1542_s7 + $0x3f0] sm:$0xff]  ;;  %v378_v15 = vpack.c.bf16 %v282_v12, %v280_v11 }
  0xe1   : > { %v410_v16 = vpack.c.bf16 %v346_v14, %v344_v13 }
  0xe7   : > { %660 = vmatmul.mubr.bf16.gmra.mxu0 %v368_v23  ;;  %788 = vmatmul.mubr.bf16.gmra.mxu1 %v400_v24 }
  0xe8   : > { %667 = vmatprep.mubr.bf16.mxu0 %v371_v25  ;;  %795 = vmatprep.mubr.bf16.mxu1 %v403_v26 }
  0xef   : > { %668 = vmatmul.mubr.bf16.gmra.mxu0 %v370_v35  ;;  %796 = vmatmul.mubr.bf16.gmra.mxu1 %v402_v36 }
  0xf0   : > { %675 = vmatprep.mubr.bf16.mxu0 %v373_v37  ;;  %803 = vmatprep.mubr.bf16.mxu1 %v405_v38 }
  0xf7   : > { %676 = vmatmul.mubr.bf16.gmra.mxu0 %v372_v47  ;;  %804 = vmatmul.mubr.bf16.gmra.mxu1 %v404_v48 }
  0xf8   : > { %683 = vmatprep.mubr.bf16.mxu0 %v375_v49  ;;  %811 = vmatprep.mubr.bf16.mxu1 %v407_v50 }
  0xff   : > { %684 = vmatmul.mubr.bf16.gmra.mxu0 %v374_v59  ;;  %812 = vmatmul.mubr.bf16.gmra.mxu1 %v406_v60 }
 0x100   : > { %691 = vmatprep.mubr.bf16.mxu0 %v377_v61  ;;  %819 = vmatprep.mubr.bf16.mxu1 %v409_v62 }
 0x107   : > { %692 = vmatmul.mubr.bf16.gmra.mxu0 %v376_v7  ;;  %820 = vmatmul.mubr.bf16.gmra.mxu1 %v408_v8 }
 0x108   : > { %699 = vmatprep.mubr.bf16.mxu0 %v379_v9  ;;  %827 = vmatprep.mubr.bf16.mxu1 %v411_v10 }
 0x10f   : > { %700 = vmatmul.mubr.bf16.gmra.mxu0 %v378_v15  ;;  %828 = vmatmul.mubr.bf16.gmra.mxu1 %v410_v16 }
 0x157   : > { %v581_v18 = vpop.f32.mrf.mxu0  ;;  %v709_v19 = vpop.f32.mrf.mxu1 }
 0x158   : > { %v582_v20 = vadd.f32 %v1712_v17, %v581_v18  ;;  %v710_v21 = vadd.f32 %v1712_v17, %v709_v19 }
 0x159   : > { %v583_v22 = vpop.f32.mrf.mxu0  ;;  %v711_v23 = vpop.f32.mrf.mxu1 }
 0x15a   : > { %v836_v24 = vmax.f32 %v582_v20, 0.0  ;;  %v868_v25 = vmax.f32 %v710_v21, 0.0 }
 0x15b   : > { %v584_v26 = vpop.f32.mrf.mxu0  ;;  %v712_v27 = vpop.f32.mrf.mxu1 }
 0x15c   : > { %900 = vst [vmem:[%s1717_s20] sm:$0xff] %v836_v24  ;;  %932 = vst [vmem:[%s1717_s20 + $0x100] sm:$0xff] %v868_v25  ;;  %v585_v28 = vadd.f32 %v1712_v17, %v584_v26  ;;  %v713_v29 = vadd.f32 %v1712_v17, %v712_v27 }
 0x15d   : > { %v586_v30 = vpop.f32.mrf.mxu0  ;;  %v714_v31 = vpop.f32.mrf.mxu1 }
 0x15e   : > { %v837_v32 = vmax.f32 %v585_v28, 0.0  ;;  %v869_v33 = vmax.f32 %v713_v29, 0.0 }
 0x15f   : > { %v589_v34 = vpop.f32.mrf.mxu0  ;;  %v717_v35 = vpop.f32.mrf.mxu1 }
 0x160   : > { %901 = vst [vmem:[%s1717_s20 + $0x8] sm:$0xff] %v837_v32  ;;  %933 = vst [vmem:[%s1717_s20 + $0x108] sm:$0xff] %v869_v33  ;;  %v590_v36 = vadd.f32 %v1712_v17, %v589_v34  ;;  %v718_v37 = vadd.f32 %v1712_v17, %v717_v35 }
 0x161   : > { %v591_v38 = vpop.f32.mrf.mxu0  ;;  %v719_v39 = vpop.f32.mrf.mxu1 }
 0x162   : > { %v838_v40 = vmax.f32 %v590_v36, 0.0  ;;  %v870_v41 = vmax.f32 %v718_v37, 0.0 }
 0x163   : > { %v592_v42 = vpop.f32.mrf.mxu0  ;;  %v720_v43 = vpop.f32.mrf.mxu1 }
 0x164   : > { %902 = vst [vmem:[%s1717_s20 + $0x10] sm:$0xff] %v838_v40  ;;  %934 = vst [vmem:[%s1717_s20 + $0x110] sm:$0xff] %v870_v41  ;;  %v593_v44 = vadd.f32 %v1712_v17, %v592_v42  ;;  %v721_v45 = vadd.f32 %v1712_v17, %v720_v43 }
 0x165   : > { %v594_v46 = vpop.f32.mrf.mxu0  ;;  %v722_v47 = vpop.f32.mrf.mxu1 }
 0x166   : > { %v839_v48 = vmax.f32 %v593_v44, 0.0  ;;  %v871_v49 = vmax.f32 %v721_v45, 0.0 }
 0x167   : > { %v597_v50 = vpop.f32.mrf.mxu0  ;;  %v725_v51 = vpop.f32.mrf.mxu1 }
 0x168   : > { %903 = vst [vmem:[%s1717_s20 + $0x18] sm:$0xff] %v839_v48  ;;  %935 = vst [vmem:[%s1717_s20 + $0x118] sm:$0xff] %v871_v49  ;;  %v598_v52 = vadd.f32 %v1712_v17, %v597_v50  ;;  %v726_v53 = vadd.f32 %v1712_v17, %v725_v51 }
 0x169   : > { %v599_v54 = vpop.f32.mrf.mxu0  ;;  %v727_v55 = vpop.f32.mrf.mxu1 }
 0x16a   : > { %v840_v56 = vmax.f32 %v598_v52, 0.0  ;;  %v872_v57 = vmax.f32 %v726_v53, 0.0 }
 0x16b   : > { %v600_v58 = vpop.f32.mrf.mxu0  ;;  %v728_v59 = vpop.f32.mrf.mxu1 }
 0x16c   : > { %904 = vst [vmem:[%s1717_s20 + $0x20] sm:$0xff] %v840_v56  ;;  %936 = vst [vmem:[%s1717_s20 + $0x120] sm:$0xff] %v872_v57  ;;  %v601_v60 = vadd.f32 %v1712_v17, %v600_v58  ;;  %v729_v61 = vadd.f32 %v1712_v17, %v728_v59 }
 0x16d   : > { %v602_v62 = vpop.f32.mrf.mxu0  ;;  %v730_v63 = vpop.f32.mrf.mxu1 }
 0x16e   : > { %v841_v0 = vmax.f32 %v601_v60, 0.0  ;;  %v873_v1 = vmax.f32 %v729_v61, 0.0 }
 0x16f   : > { %v605_v2 = vpop.f32.mrf.mxu0  ;;  %v733_v3 = vpop.f32.mrf.mxu1 }
 0x170   : > { %905 = vst [vmem:[%s1717_s20 + $0x28] sm:$0xff] %v841_v0  ;;  %937 = vst [vmem:[%s1717_s20 + $0x128] sm:$0xff] %v873_v1  ;;  %v606_v4 = vadd.f32 %v1712_v17, %v605_v2  ;;  %v734_v5 = vadd.f32 %v1712_v17, %v733_v3 }
 0x171   : > { %v607_v6 = vpop.f32.mrf.mxu0  ;;  %v735_v7 = vpop.f32.mrf.mxu1 }
 0x172   : > { %v842_v8 = vmax.f32 %v606_v4, 0.0  ;;  %v874_v9 = vmax.f32 %v734_v5, 0.0 }
 0x173   : > { %v608_v10 = vpop.f32.mrf.mxu0  ;;  %v736_v11 = vpop.f32.mrf.mxu1 }
 0x174   : > { %906 = vst [vmem:[%s1717_s20 + $0x30] sm:$0xff] %v842_v8  ;;  %938 = vst [vmem:[%s1717_s20 + $0x130] sm:$0xff] %v874_v9  ;;  %v609_v12 = vadd.f32 %v1712_v17, %v608_v10  ;;  %v737_v13 = vadd.f32 %v1712_v17, %v736_v11 }
 0x175   : > { %v610_v14 = vpop.f32.mrf.mxu0  ;;  %v738_v15 = vpop.f32.mrf.mxu1 }
 0x176   : > { %v843_v16 = vmax.f32 %v609_v12, 0.0  ;;  %v875_v18 = vmax.f32 %v737_v13, 0.0 }
 0x177   : > { %v613_v19 = vpop.f32.mrf.mxu0  ;;  %v741_v20 = vpop.f32.mrf.mxu1 }
 0x178   : > { %907 = vst [vmem:[%s1717_s20 + $0x38] sm:$0xff] %v843_v16  ;;  %939 = vst [vmem:[%s1717_s20 + $0x138] sm:$0xff] %v875_v18  ;;  %v614_v21 = vadd.f32 %v1712_v17, %v613_v19  ;;  %v742_v22 = vadd.f32 %v1712_v17, %v741_v20 }
 0x179   : > { %v615_v23 = vpop.f32.mrf.mxu0  ;;  %v743_v24 = vpop.f32.mrf.mxu1 }
 0x17a   : > { %v844_v25 = vmax.f32 %v614_v21, 0.0  ;;  %v876_v26 = vmax.f32 %v742_v22, 0.0 }
 0x17b   : > { %v616_v27 = vpop.f32.mrf.mxu0  ;;  %v744_v28 = vpop.f32.mrf.mxu1 }
 0x17c   : > { %908 = vst [vmem:[%s1717_s20 + $0x40] sm:$0xff] %v844_v25  ;;  %940 = vst [vmem:[%s1717_s20 + $0x140] sm:$0xff] %v876_v26  ;;  %v617_v29 = vadd.f32 %v1712_v17, %v616_v27  ;;  %v745_v30 = vadd.f32 %v1712_v17, %v744_v28 }
 0x17d   : > { %v618_v31 = vpop.f32.mrf.mxu0  ;;  %v746_v32 = vpop.f32.mrf.mxu1 }
 0x17e   : > { %v845_v33 = vmax.f32 %v617_v29, 0.0  ;;  %v877_v34 = vmax.f32 %v745_v30, 0.0 }
 0x17f   : > { %v621_v35 = vpop.f32.mrf.mxu0  ;;  %v749_v36 = vpop.f32.mrf.mxu1 }
 0x180   : > { %909 = vst [vmem:[%s1717_s20 + $0x48] sm:$0xff] %v845_v33  ;;  %941 = vst [vmem:[%s1717_s20 + $0x148] sm:$0xff] %v877_v34  ;;  %v622_v37 = vadd.f32 %v1712_v17, %v621_v35  ;;  %v750_v38 = vadd.f32 %v1712_v17, %v749_v36 }
 0x181   : > { %v623_v39 = vpop.f32.mrf.mxu0  ;;  %v751_v40 = vpop.f32.mrf.mxu1 }
 0x182   : > { %v846_v41 = vmax.f32 %v622_v37, 0.0  ;;  %v878_v42 = vmax.f32 %v750_v38, 0.0 }
 0x183   : > { %v624_v43 = vpop.f32.mrf.mxu0  ;;  %v752_v44 = vpop.f32.mrf.mxu1 }
 0x184   : > { %910 = vst [vmem:[%s1717_s20 + $0x50] sm:$0xff] %v846_v41  ;;  %942 = vst [vmem:[%s1717_s20 + $0x150] sm:$0xff] %v878_v42  ;;  %v625_v45 = vadd.f32 %v1712_v17, %v624_v43  ;;  %v753_v46 = vadd.f32 %v1712_v17, %v752_v44 }
 0x185   : > { %v626_v47 = vpop.f32.mrf.mxu0  ;;  %v754_v48 = vpop.f32.mrf.mxu1 }
 0x186   : > { %v847_v49 = vmax.f32 %v625_v45, 0.0  ;;  %v879_v50 = vmax.f32 %v753_v46, 0.0 }
 0x187   : > { %v629_v51 = vpop.f32.mrf.mxu0  ;;  %v757_v52 = vpop.f32.mrf.mxu1 }
 0x188   : > { %911 = vst [vmem:[%s1717_s20 + $0x58] sm:$0xff] %v847_v49  ;;  %943 = vst [vmem:[%s1717_s20 + $0x158] sm:$0xff] %v879_v50  ;;  %v630_v53 = vadd.f32 %v1712_v17, %v629_v51  ;;  %v758_v54 = vadd.f32 %v1712_v17, %v757_v52 }
 0x189   : > { %v631_v55 = vpop.f32.mrf.mxu0  ;;  %v759_v56 = vpop.f32.mrf.mxu1 }
 0x18a   : > { %v848_v57 = vmax.f32 %v630_v53, 0.0  ;;  %v880_v58 = vmax.f32 %v758_v54, 0.0 }
 0x18b   : > { %v632_v59 = vpop.f32.mrf.mxu0  ;;  %v760_v60 = vpop.f32.mrf.mxu1 }
 0x18c   : > { %912 = vst [vmem:[%s1717_s20 + $0x60] sm:$0xff] %v848_v57  ;;  %944 = vst [vmem:[%s1717_s20 + $0x160] sm:$0xff] %v880_v58  ;;  %v633_v61 = vadd.f32 %v1712_v17, %v632_v59  ;;  %v761_v62 = vadd.f32 %v1712_v17, %v760_v60 }
 0x18d   : > { %v634_v63 = vpop.f32.mrf.mxu0  ;;  %v762_v0 = vpop.f32.mrf.mxu1 }
 0x18e   : > { %v849_v1 = vmax.f32 %v633_v61, 0.0  ;;  %v881_v2 = vmax.f32 %v761_v62, 0.0 }
 0x18f   : > { %v637_v3 = vpop.f32.mrf.mxu0  ;;  %v765_v4 = vpop.f32.mrf.mxu1 }
 0x190   : > { %913 = vst [vmem:[%s1717_s20 + $0x68] sm:$0xff] %v849_v1  ;;  %945 = vst [vmem:[%s1717_s20 + $0x168] sm:$0xff] %v881_v2  ;;  %v638_v5 = vadd.f32 %v1712_v17, %v637_v3  ;;  %v766_v6 = vadd.f32 %v1712_v17, %v765_v4 }
 0x191   : > { %v639_v7 = vpop.f32.mrf.mxu0  ;;  %v767_v8 = vpop.f32.mrf.mxu1 }
 0x192   : > { %v850_v9 = vmax.f32 %v638_v5, 0.0  ;;  %v882_v10 = vmax.f32 %v766_v6, 0.0 }
 0x193   : > { %v640_v11 = vpop.f32.mrf.mxu0  ;;  %v768_v12 = vpop.f32.mrf.mxu1 }
 0x194   : > { %914 = vst [vmem:[%s1717_s20 + $0x70] sm:$0xff] %v850_v9  ;;  %946 = vst [vmem:[%s1717_s20 + $0x170] sm:$0xff] %v882_v10  ;;  %v641_v13 = vadd.f32 %v1712_v17, %v640_v11  ;;  %v769_v14 = vadd.f32 %v1712_v17, %v768_v12 }
 0x195   : > { %v642_v15 = vpop.f32.mrf.mxu0  ;;  %v770_v16 = vpop.f32.mrf.mxu1 }
 0x196   : > { %v851_v18 = vmax.f32 %v641_v13, 0.0  ;;  %v883_v19 = vmax.f32 %v769_v14, 0.0 }
 0x197   : > { %v645_v20 = vpop.f32.mrf.mxu0  ;;  %v773_v21 = vpop.f32.mrf.mxu1 }
 0x198   : > { %915 = vst [vmem:[%s1717_s20 + $0x78] sm:$0xff] %v851_v18  ;;  %947 = vst [vmem:[%s1717_s20 + $0x178] sm:$0xff] %v883_v19  ;;  %v646_v22 = vadd.f32 %v1712_v17, %v645_v20  ;;  %v774_v23 = vadd.f32 %v1712_v17, %v773_v21 }
 0x199   : > { %v647_v24 = vpop.f32.mrf.mxu0  ;;  %v775_v25 = vpop.f32.mrf.mxu1 }
 0x19a   : > { %v852_v26 = vmax.f32 %v646_v22, 0.0  ;;  %v884_v27 = vmax.f32 %v774_v23, 0.0 }
 0x19b   : > { %v648_v28 = vpop.f32.mrf.mxu0  ;;  %v776_v29 = vpop.f32.mrf.mxu1 }
 0x19c   : > { %916 = vst [vmem:[%s1717_s20 + $0x80] sm:$0xff] %v852_v26  ;;  %948 = vst [vmem:[%s1717_s20 + $0x180] sm:$0xff] %v884_v27  ;;  %v649_v30 = vadd.f32 %v1712_v17, %v648_v28  ;;  %v777_v31 = vadd.f32 %v1712_v17, %v776_v29 }
 0x19d   : > { %v650_v32 = vpop.f32.mrf.mxu0  ;;  %v778_v33 = vpop.f32.mrf.mxu1 }
 0x19e   : > { %v853_v34 = vmax.f32 %v649_v30, 0.0  ;;  %v885_v35 = vmax.f32 %v777_v31, 0.0 }
 0x19f   : > { %v653_v36 = vpop.f32.mrf.mxu0  ;;  %v781_v37 = vpop.f32.mrf.mxu1 }
 0x1a0   : > { %917 = vst [vmem:[%s1717_s20 + $0x88] sm:$0xff] %v853_v34  ;;  %949 = vst [vmem:[%s1717_s20 + $0x188] sm:$0xff] %v885_v35  ;;  %v654_v38 = vadd.f32 %v1712_v17, %v653_v36  ;;  %v782_v39 = vadd.f32 %v1712_v17, %v781_v37 }
 0x1a1   : > { %v655_v40 = vpop.f32.mrf.mxu0  ;;  %v783_v41 = vpop.f32.mrf.mxu1 }
 0x1a2   : > { %v854_v42 = vmax.f32 %v654_v38, 0.0  ;;  %v886_v43 = vmax.f32 %v782_v39, 0.0 }
 0x1a3   : > { %v656_v44 = vpop.f32.mrf.mxu0  ;;  %v784_v45 = vpop.f32.mrf.mxu1 }
 0x1a4   : > { %918 = vst [vmem:[%s1717_s20 + $0x90] sm:$0xff] %v854_v42  ;;  %950 = vst [vmem:[%s1717_s20 + $0x190] sm:$0xff] %v886_v43  ;;  %v657_v46 = vadd.f32 %v1712_v17, %v656_v44  ;;  %v785_v47 = vadd.f32 %v1712_v17, %v784_v45 }
 0x1a5   : > { %v658_v48 = vpop.f32.mrf.mxu0  ;;  %v786_v49 = vpop.f32.mrf.mxu1 }
 0x1a6   : > { %v855_v50 = vmax.f32 %v657_v46, 0.0  ;;  %v887_v51 = vmax.f32 %v785_v47, 0.0 }
 0x1a7   : > { %v661_v52 = vpop.f32.mrf.mxu0  ;;  %v789_v53 = vpop.f32.mrf.mxu1 }
 0x1a8   : > { %919 = vst [vmem:[%s1717_s20 + $0x98] sm:$0xff] %v855_v50  ;;  %951 = vst [vmem:[%s1717_s20 + $0x198] sm:$0xff] %v887_v51  ;;  %v662_v54 = vadd.f32 %v1712_v17, %v661_v52  ;;  %v790_v55 = vadd.f32 %v1712_v17, %v789_v53 }
 0x1a9   : > { %v663_v56 = vpop.f32.mrf.mxu0  ;;  %v791_v57 = vpop.f32.mrf.mxu1 }
 0x1aa   : > { %v856_v58 = vmax.f32 %v662_v54, 0.0  ;;  %v888_v59 = vmax.f32 %v790_v55, 0.0 }
 0x1ab   : > { %v664_v60 = vpop.f32.mrf.mxu0  ;;  %v792_v61 = vpop.f32.mrf.mxu1 }
 0x1ac   : > { %920 = vst [vmem:[%s1717_s20 + $0xa0] sm:$0xff] %v856_v58  ;;  %952 = vst [vmem:[%s1717_s20 + $0x1a0] sm:$0xff] %v888_v59  ;;  %v665_v62 = vadd.f32 %v1712_v17, %v664_v60  ;;  %v793_v63 = vadd.f32 %v1712_v17, %v792_v61 }
 0x1ad   : > { %v666_v0 = vpop.f32.mrf.mxu0  ;;  %v794_v1 = vpop.f32.mrf.mxu1 }
 0x1ae   : > { %v857_v2 = vmax.f32 %v665_v62, 0.0  ;;  %v889_v3 = vmax.f32 %v793_v63, 0.0 }
 0x1af   : > { %v669_v4 = vpop.f32.mrf.mxu0  ;;  %v797_v5 = vpop.f32.mrf.mxu1 }
 0x1b0   : > { %921 = vst [vmem:[%s1717_s20 + $0xa8] sm:$0xff] %v857_v2  ;;  %953 = vst [vmem:[%s1717_s20 + $0x1a8] sm:$0xff] %v889_v3  ;;  %v670_v6 = vadd.f32 %v1712_v17, %v669_v4  ;;  %v798_v7 = vadd.f32 %v1712_v17, %v797_v5 }
 0x1b1   : > { %v671_v8 = vpop.f32.mrf.mxu0  ;;  %v799_v9 = vpop.f32.mrf.mxu1 }
 0x1b2   : > { %v858_v10 = vmax.f32 %v670_v6, 0.0  ;;  %v890_v11 = vmax.f32 %v798_v7, 0.0 }
 0x1b3   : > { %v672_v12 = vpop.f32.mrf.mxu0  ;;  %v800_v13 = vpop.f32.mrf.mxu1 }
 0x1b4   : > { %922 = vst [vmem:[%s1717_s20 + $0xb0] sm:$0xff] %v858_v10  ;;  %954 = vst [vmem:[%s1717_s20 + $0x1b0] sm:$0xff] %v890_v11  ;;  %v673_v14 = vadd.f32 %v1712_v17, %v672_v12  ;;  %v801_v15 = vadd.f32 %v1712_v17, %v800_v13 }
 0x1b5   : > { %v674_v16 = vpop.f32.mrf.mxu0  ;;  %v802_v18 = vpop.f32.mrf.mxu1 }
 0x1b6   : > { %v859_v19 = vmax.f32 %v673_v14, 0.0  ;;  %v891_v20 = vmax.f32 %v801_v15, 0.0 }
 0x1b7   : > { %v677_v21 = vpop.f32.mrf.mxu0  ;;  %v805_v22 = vpop.f32.mrf.mxu1 }
 0x1b8   : > { %923 = vst [vmem:[%s1717_s20 + $0xb8] sm:$0xff] %v859_v19  ;;  %955 = vst [vmem:[%s1717_s20 + $0x1b8] sm:$0xff] %v891_v20  ;;  %v678_v23 = vadd.f32 %v1712_v17, %v677_v21  ;;  %v806_v24 = vadd.f32 %v1712_v17, %v805_v22 }
 0x1b9   : > { %v679_v25 = vpop.f32.mrf.mxu0  ;;  %v807_v26 = vpop.f32.mrf.mxu1 }
 0x1ba   : > { %v860_v27 = vmax.f32 %v678_v23, 0.0  ;;  %v892_v28 = vmax.f32 %v806_v24, 0.0 }
 0x1bb   : > { %v680_v29 = vpop.f32.mrf.mxu0  ;;  %v808_v30 = vpop.f32.mrf.mxu1 }
 0x1bc   : > { %924 = vst [vmem:[%s1717_s20 + $0xc0] sm:$0xff] %v860_v27  ;;  %956 = vst [vmem:[%s1717_s20 + $0x1c0] sm:$0xff] %v892_v28  ;;  %v681_v31 = vadd.f32 %v1712_v17, %v680_v29  ;;  %v809_v32 = vadd.f32 %v1712_v17, %v808_v30 }
 0x1bd   : > { %v682_v33 = vpop.f32.mrf.mxu0  ;;  %v810_v34 = vpop.f32.mrf.mxu1 }
 0x1be   : > { %v861_v35 = vmax.f32 %v681_v31, 0.0  ;;  %v893_v36 = vmax.f32 %v809_v32, 0.0 }
 0x1bf   : > { %v685_v37 = vpop.f32.mrf.mxu0  ;;  %v813_v38 = vpop.f32.mrf.mxu1 }
 0x1c0   : > { %925 = vst [vmem:[%s1717_s20 + $0xc8] sm:$0xff] %v861_v35  ;;  %957 = vst [vmem:[%s1717_s20 + $0x1c8] sm:$0xff] %v893_v36  ;;  %v686_v39 = vadd.f32 %v1712_v17, %v685_v37  ;;  %v814_v40 = vadd.f32 %v1712_v17, %v813_v38 }
 0x1c1   : > { %v687_v41 = vpop.f32.mrf.mxu0  ;;  %v815_v42 = vpop.f32.mrf.mxu1 }
 0x1c2   : > { %v862_v43 = vmax.f32 %v686_v39, 0.0  ;;  %v894_v44 = vmax.f32 %v814_v40, 0.0 }
 0x1c3   : > { %v688_v45 = vpop.f32.mrf.mxu0  ;;  %v816_v46 = vpop.f32.mrf.mxu1 }
 0x1c4   : > { %926 = vst [vmem:[%s1717_s20 + $0xd0] sm:$0xff] %v862_v43  ;;  %958 = vst [vmem:[%s1717_s20 + $0x1d0] sm:$0xff] %v894_v44  ;;  %v689_v47 = vadd.f32 %v1712_v17, %v688_v45  ;;  %v817_v48 = vadd.f32 %v1712_v17, %v816_v46 }
 0x1c5   : > { %v690_v49 = vpop.f32.mrf.mxu0  ;;  %v818_v50 = vpop.f32.mrf.mxu1 }
 0x1c6   : > { %v863_v51 = vmax.f32 %v689_v47, 0.0  ;;  %v895_v52 = vmax.f32 %v817_v48, 0.0 }
 0x1c7   : > { %v693_v53 = vpop.f32.mrf.mxu0  ;;  %v821_v54 = vpop.f32.mrf.mxu1 }
 0x1c8   : > { %927 = vst [vmem:[%s1717_s20 + $0xd8] sm:$0xff] %v863_v51  ;;  %959 = vst [vmem:[%s1717_s20 + $0x1d8] sm:$0xff] %v895_v52  ;;  %v694_v55 = vadd.f32 %v1712_v17, %v693_v53  ;;  %v822_v56 = vadd.f32 %v1712_v17, %v821_v54 }
 0x1c9   : > { %v695_v57 = vpop.f32.mrf.mxu0  ;;  %v823_v58 = vpop.f32.mrf.mxu1 }
 0x1ca   : > { %v864_v59 = vmax.f32 %v694_v55, 0.0  ;;  %v896_v60 = vmax.f32 %v822_v56, 0.0 }
 0x1cb   : > { %v696_v61 = vpop.f32.mrf.mxu0  ;;  %v824_v62 = vpop.f32.mrf.mxu1 }
 0x1cc   : > { %928 = vst [vmem:[%s1717_s20 + $0xe0] sm:$0xff] %v864_v59  ;;  %960 = vst [vmem:[%s1717_s20 + $0x1e0] sm:$0xff] %v896_v60  ;;  %v697_v63 = vadd.f32 %v1712_v17, %v696_v61  ;;  %v825_v0 = vadd.f32 %v1712_v17, %v824_v62 }
 0x1cd   : > { %v698_v1 = vpop.f32.mrf.mxu0  ;;  %v826_v2 = vpop.f32.mrf.mxu1 }
 0x1ce   : > { %v865_v3 = vmax.f32 %v697_v63, 0.0  ;;  %v897_v4 = vmax.f32 %v825_v0, 0.0 }
 0x1cf   : > { %v701_v5 = vpop.f32.mrf.mxu0  ;;  %v829_v6 = vpop.f32.mrf.mxu1 }
 0x1d0   : > { %929 = vst [vmem:[%s1717_s20 + $0xe8] sm:$0xff] %v865_v3  ;;  %961 = vst [vmem:[%s1717_s20 + $0x1e8] sm:$0xff] %v897_v4  ;;  %v702_v7 = vadd.f32 %v1712_v17, %v701_v5  ;;  %v830_v8 = vadd.f32 %v1712_v17, %v829_v6 }
 0x1d1   : > { %v703_v9 = vpop.f32.mrf.mxu0  ;;  %v831_v10 = vpop.f32.mrf.mxu1 }
 0x1d2   : > { %v866_v11 = vmax.f32 %v702_v7, 0.0  ;;  %v898_v12 = vmax.f32 %v830_v8, 0.0 }
 0x1d3   : > { %v704_v13 = vpop.f32.mrf.mxu0  ;;  %v832_v14 = vpop.f32.mrf.mxu1 }
 0x1d4   : > { %930 = vst [vmem:[%s1717_s20 + $0xf0] sm:$0xff] %v866_v11  ;;  %962 = vst [vmem:[%s1717_s20 + $0x1f0] sm:$0xff] %v898_v12  ;;  %v705_v15 = vadd.f32 %v1712_v17, %v704_v13  ;;  %v833_v16 = vadd.f32 %v1712_v17, %v832_v14 }
 0x1d5   : > { %v706_v18 = vpop.f32.mrf.mxu0  ;;  %v834_v19 = vpop.f32.mrf.mxu1 }
 0x1d6   : > { %v867_v20 = vmax.f32 %v705_v15, 0.0  ;;  %v899_v21 = vmax.f32 %v833_v16, 0.0 }
 0x1d8   : > { %931 = vst [vmem:[%s1717_s20 + $0xf8] sm:$0xff] %v867_v20  ;;  %963 = vst [vmem:[%s1717_s20 + $0x1f8] sm:$0xff] %v899_v21 }
 0x1d9   : > { %1324 = shalt.err (!%p1321_p13)
}
 0x1da   : > { %s1325_s24 = scalar_lea.hbm %s1848_s9, 8192  ;;  %s1329_s5 = scalar_lea.hbm %s1897_s3, 32768 }
 0x1db   : > { %p1326_p3 = scmp.ne.s32.totalorder %s1848_s9, %s1325_s24  ;;  %p1330_p4 = scmp.lt.s32.totalorder %s1848_s9, %s1897_s3 }
 0x1dc   : > { %p1331_p6 = scmp.lt.s32.totalorder %s1329_s5, %s1325_s24 }
 0x1dd   : > { %p1327_p5 = pnand %p1326_p3, %p1913_p10 }
 0x1de   : > { %p1332_p8 = por %p1331_p6, %p1330_p4 }
 0x1df   : > { %p1328_p0 = pneg %p1327_p5 }
 0x1e1   : > { %p1333_p9 = pnand %p1332_p8, %p1328_p0 }
 0x1e3   : > { %1336 = shalt.err (!%p1333_p9)
}
 0x1e4   : > { %s1390_s18 = smov 128   ;;  %s1391_s20 = smov 8  }
 0x1e5   : > { %1151 = dma.vmem_to_hbm [thread:$0]  (%p1913_p10), %s1850_s28, 8192, %s1848_s9, %s965_s16, %s1390_s18, %s1390_s18, %s1391_s20  }
 0x1e6 PF: > { %p1173_p1 = scmp.ge.s32.totalorder %s1379_s15, 2  ;;  %s993_s26 = sand.u32 1, %s1367_s12  }
 0x1e7   : > { %p1914_p2 = scmp.ne.s32.totalorder %s1903_s19, 0  ;;  %s994_s29 = scalar_lea.sflag [#allocation4], %s993_s26 }
 0x1e9   : > { %p1165_p11 = pnand %p1173_p1, %p1914_p2 }
 0x1eb   : > { %p1166_p7 = pneg %p1165_p11 }
 0x1ed   : > { %1362 = dma.done.wait (%p1166_p7), %s994_s29, 8192  }
 0x1ee   : > { %1364 = vsyncadd (%p1166_p7), %s994_s29, 4294959104  ;;  %p17_p12 = scmp.ge.s32.totalorder %s1483_s8, 6   ;;  %s1915_s12 = smov %s1371_s13 }
 0x1ef   : > { %s1916_s13 = smov %s1375_s14  ;;  %s1917_s14 = smov %s1499_s17 }
 0x1f0   : > { %s1918_s15 = smov %s1483_s8  ;;  %19 = sbr.rel (!%p17_p12) target bundleno = 6 (0x6), region = 85 }
 0x1f5   :  { %999 = vsyncpa [#allocation3], 1 }
 0x1f6   :  { %1001 = vsyncpa [#allocation3 + $0x1], 1 }
 0x1f7   :  { %1002 = vsyncpa [#allocation6], 1 }
 0x1f8   :  { %1003 = vsyncpa [#allocation4], 1 }
 0x1f9   :  { %1005 = vsyncpa [#allocation4 + $0x1], 1 }

</bundles_post_ra>
